<compile_context>
chip_gen: v5e
topology: v5e:2x2
jax: 0.10.0
libtpu: 0.0.40
codegen_flags: <defaults>
</compile_context>

<pallas_src>
import functools

import numpy as np
import jax
import jax.numpy as jnp
from jax import lax
from jax.experimental import pallas as pl
from jax.experimental.pallas import tpu as pltpu


def _egp_kernel(x_ref, w1_ref, b1_ref, qscale_ref, w2k_ref, b2k_ref, w2q_ref, b2q_ref,
                out_ref,
                q_sc, v_sc, colb_sc, rowb_sc, score_sc,
                *, head_size, tq, num_heads):
    """Grid = (B, L//tq, num_heads), heads innermost.  Writes one (tq, L) tile."""
    qt = pl.program_id(1)
    head = pl.program_id(2)

    # ---- per-batch setup: dense, (folded) rope scale, dense4head biases ----------
    @pl.when(jnp.logical_and(qt == 0, head == 0))
    def _():
        x = x_ref[0]                                                      # (L, hidden)
        h = jnp.dot(x, w1_ref[...], preferred_element_type=jnp.float32) + b1_ref[...]
        # The module's "rope" is a pure per-channel scale s; s*s and 1/sqrt(head_size)
        # are pre-folded into qscale so only q is scaled, v stays untouched.
        q_sc[...] = h[:, :head_size] * qscale_ref[...]                    # (L, hs)
        v_sc[...] = h[:, head_size:]                                      # (L, hs)
        # dense4head even output cols -> key-side bias, laid out (num_heads, L) so a
        # per-head row broadcasts along the lane axis with no transpose.  w2k is passed
        # pre-transposed; contract last dims of both operands (MXU-native, no XLU).
        colb_sc[...] = lax.dot_general(
            w2k_ref[...], h, (((1,), (1,)), ((), ())),
            preferred_element_type=jnp.float32) + b2k_ref[...]            # (nh, L)
        # dense4head odd output cols -> query-side bias, (L, num_heads): per-tile row
        # slices come out as (tq, nh) with no transpose.
        rowb_sc[...] = jnp.dot(h, w2q_ref[...],
                               preferred_element_type=jnp.float32) + b2q_ref[...]

    row_start = pl.multiple_of(qt * tq, tq)

    # ---- per (batch, q-tile): head-independent score tile (amortized over heads) ---
    @pl.when(head == 0)
    def _():
        q_tile = q_sc[pl.ds(row_start, tq), :]                            # (tq, hs)
        # scores[i, j] = <q_i * scale, v_j>; contract last dims -> no v.T materialized.
        score_sc[...] = lax.dot_general(
            q_tile, v_sc[...], (((1,), (1,)), ((), ())),
            preferred_element_type=jnp.float32)                           # (tq, L)

    # ---- per head: add biases, apply triu mask, store the lane-dense tile ----------
    col_b = colb_sc[pl.ds(head, 1), :]                                    # (1, L)
    rowb_tile = rowb_sc[pl.ds(row_start, tq), :]                          # (tq, nh)
    head_onehot = lax.broadcasted_iota(jnp.int32, (1, num_heads), 1) == head
    row_b = jnp.sum(jnp.where(head_onehot, rowb_tile, 0.0),
                    axis=1, keepdims=True)                                # (tq, 1)

    tile = score_sc[...] + col_b + row_b                                  # (tq, L)
    L = tile.shape[1]
    i_glob = row_start + lax.broadcasted_iota(jnp.int32, (tq, L), 0)
    j = lax.broadcasted_iota(jnp.int32, (tq, L), 1)
    out_ref[0, 0] = jnp.where(i_glob <= j, tile, 0.0)


def _rope_scale(head_size, if_rope):
    """Per-channel scale applied to q: (rope scale)^2 / sqrt(head_size)."""
    if not if_rope:
        return jnp.full((1, head_size), 1.0 / np.sqrt(head_size), jnp.float32)
    idx = jnp.arange(0, head_size // 2, dtype=jnp.float32)
    inv = jnp.power(jnp.float32(10000.0), -2.0 * idx / head_size)
    emb_cos = jnp.repeat(jnp.cos(inv), 2)
    emb_sin = jnp.repeat(jnp.sin(inv), 2)
    trans = jnp.array([-1.0, 1.0] * (head_size // 2), dtype=jnp.float32)
    s = emb_cos + trans * emb_sin     # the literal "rope" is just t * s (per channel)
    return ((s * s) / np.sqrt(head_size)).reshape(1, head_size).astype(jnp.float32)


def _pick_tq(L, max_tq=256):
    """Largest query-tile that is a multiple of 8, divides L, and is <= max_tq."""
    if L <= max_tq:
        return L
    for t in range(min(max_tq, L), 7, -1):
        if t % 8 == 0 and L % t == 0:
            return t
    return L


def init_params(key, hidden_size, num_heads, head_size):
    """Deterministic nn.Linear-style init (uniform +-1/sqrt(fan_in))."""
    k1, k2, k3, k4 = jax.random.split(key, 4)
    bound1 = 1.0 / np.sqrt(hidden_size)
    w1 = jax.random.uniform(k1, (hidden_size, 2 * head_size), jnp.float32, -bound1, bound1)
    b1 = jax.random.uniform(k2, (2 * head_size,), jnp.float32, -bound1, bound1)
    bound2 = 1.0 / np.sqrt(2 * head_size)
    w2 = jax.random.uniform(k3, (2 * head_size, 2 * num_heads), jnp.float32, -bound2, bound2)
    b2 = jax.random.uniform(k4, (2 * num_heads,), jnp.float32, -bound2, bound2)
    return dict(w1=w1, b1=b1, w2=w2, b2=b2)


def efficient_global_pointer(inputs, attention_mask, params, *, num_heads, head_size,
                             if_rope=True, max_tq=256):
    """Pallas implementation of EfficientGlobalPointer.forward.

    Returns (B, 1, 1, num_heads, L, L), matching the literal PyTorch forward.
    For best store throughput L should be a multiple of 128 (lane-dense vst).
    """
    B, L, hidden = inputs.shape
    # TODO(synk): in the original forward, `attention_mask` is consumed as the seq_len
    # of the triu mask (argument swap into scores_mask); the per-token mask therefore
    # has no effect and is only checked for consistency here.
    assert int(attention_mask) == L

    tq = _pick_tq(L, max_tq)
    n_qt = L // tq

    w1 = params["w1"]
    b1 = params["b1"].reshape(1, 2 * head_size)
    qscale = _rope_scale(head_size, if_rope)
    # dense4head split into even (key-side) / odd (query-side) output columns;
    # the /2 and the nn.Linear bias are folded host-side.
    w2k = jnp.transpose(params["w2"][:, 0::2] * 0.5)            # (nh, 2hs)  key-side
    b2k = (params["b2"][0::2] * 0.5).reshape(num_heads, 1)      # (nh, 1)
    w2q = params["w2"][:, 1::2] * 0.5                            # (2hs, nh) query-side
    b2q = (params["b2"][1::2] * 0.5).reshape(1, num_heads)       # (1, nh)

    kernel = functools.partial(_egp_kernel, head_size=head_size, tq=tq,
                               num_heads=num_heads)

    # TODO(synk): on v6e/v7x, casting q/v/h to bfloat16 before the MXU dots (f32 accum)
    # would roughly double matmul throughput but changes numerics vs. the f32 reference.
    scores = pl.pallas_call(
        kernel,
        out_shape=jax.ShapeDtypeStruct((B, num_heads, L, L), jnp.float32),
        grid=(B, n_qt, num_heads),
        in_specs=[
            pl.BlockSpec((1, L, hidden), lambda b, qt, h: (b, 0, 0)),
            pl.BlockSpec((hidden, 2 * head_size), lambda b, qt, h: (0, 0)),
            pl.BlockSpec((1, 2 * head_size), lambda b, qt, h: (0, 0)),
            pl.BlockSpec((1, head_size), lambda b, qt, h: (0, 0)),
            pl.BlockSpec((num_heads, 2 * head_size), lambda b, qt, h: (0, 0)),
            pl.BlockSpec((num_heads, 1), lambda b, qt, h: (0, 0)),
            pl.BlockSpec((2 * head_size, num_heads), lambda b, qt, h: (0, 0)),
            pl.BlockSpec((1, num_heads), lambda b, qt, h: (0, 0)),
        ],
        out_specs=pl.BlockSpec((1, 1, tq, L), lambda b, qt, h: (b, h, qt, 0)),
        scratch_shapes=[
            pltpu.VMEM((L, head_size), jnp.float32),     # q (rope+scale folded)
            pltpu.VMEM((L, head_size), jnp.float32),     # v
            pltpu.VMEM((num_heads, L), jnp.float32),     # key-side bias
            pltpu.VMEM((L, num_heads), jnp.float32),     # query-side bias
            pltpu.VMEM((tq, L), jnp.float32),            # per-tile scores
        ],
        # Batch axis is megacore-parallel; q-tile/head axes carry scratch reuse and
        # must stay on one core ("arbitrary").
        compiler_params=pltpu.CompilerParams(
            dimension_semantics=("parallel", "arbitrary", "arbitrary")),
    )(inputs, w1, b1, qscale, w2k, b2k, w2q, b2q)

    # literal scores_mask(scores, seq_len): scores[:, None, None, :] * triu(L, L)
    return scores[:, None, None, :, :, :]


def _reference(inputs, seq_len, params, *, num_heads, head_size, if_rope=True):
    """Pure-JAX transcription of the PyTorch forward (for validation)."""
    h = inputs @ params["w1"] + params["b1"]
    q, v = h[..., :head_size], h[..., head_size:]
    if if_rope:
        idx = jnp.arange(0, head_size // 2, dtype=jnp.float32)
        inv = jnp.power(jnp.float32(10000.0), -2.0 * idx / head_size)
        cos = jnp.repeat(jnp.cos(inv), 2)
        sin = jnp.repeat(jnp.sin(inv), 2)
        trans = jnp.array([-1.0, 1.0] * (head_size // 2), dtype=jnp.float32)
        q = q * cos + q * trans * sin
        v = v * cos + v * trans * sin
    scores = jnp.einsum("bid,bjd->bij", q, v) / np.sqrt(head_size)
    bias = jnp.transpose(h @ params["w2"] + params["b2"], (0, 2, 1)) / 2
    scores = scores[:, None] + bias[:, ::2, None] + bias[:, 1::2, :, None]
    triu = jnp.triu(jnp.ones((seq_len, seq_len), jnp.float32))
    return scores[:, None, None, :] * triu


if __name__ == "__main__":
    B, L, hidden_size = 2, 16, 32
    num_heads, head_size = 4, 16
    if_rope = True

    key = jax.random.PRNGKey(0)
    k_in, k_par = jax.random.split(key)
    inputs = jax.random.normal(k_in, (B, L, hidden_size), dtype=jnp.float32)
    attention_mask = L  # consumed as seq_len by the literal forward (see note above)
    params = init_params(k_par, hidden_size, num_heads, head_size)

    out = efficient_global_pointer(inputs, attention_mask, params,
                                   num_heads=num_heads, head_size=head_size,
                                   if_rope=if_rope)
    out = jax.block_until_ready(out)

    ref = _reference(inputs, L, params, num_heads=num_heads, head_size=head_size,
                     if_rope=if_rope)
    assert out.shape == (B, 1, 1, num_heads, L, L), out.shape
    np.testing.assert_allclose(np.asarray(out), np.asarray(ref), rtol=1e-5, atol=1e-5)

    print("KERNEL_OK")
</pallas_src>

<mosaic_0001>
module attributes {stable_mosaic.version = 11 : i64} {
  func.func @_egp_kernel(%arg0: i32, %arg1: i32, %arg2: i32, %arg3: memref<1x16x32xf32, #tpu.memory_space<vmem>>, %arg4: memref<32x32xf32, #tpu.memory_space<vmem>>, %arg5: memref<1x32xf32, #tpu.memory_space<vmem>>, %arg6: memref<1x16xf32, #tpu.memory_space<vmem>>, %arg7: memref<4x32xf32, #tpu.memory_space<vmem>>, %arg8: memref<4x1xf32, #tpu.memory_space<vmem>>, %arg9: memref<32x4xf32, #tpu.memory_space<vmem>>, %arg10: memref<1x4xf32, #tpu.memory_space<vmem>>, %arg11: memref<1x1x16x16xf32, #tpu.memory_space<vmem>>, %arg12: memref<16x16xf32, #tpu.memory_space<vmem>>, %arg13: memref<16x16xf32, #tpu.memory_space<vmem>>, %arg14: memref<4x16xf32, #tpu.memory_space<vmem>>, %arg15: memref<16x4xf32, #tpu.memory_space<vmem>>, %arg16: memref<16x16xf32, #tpu.memory_space<vmem>>) attributes {dimension_semantics = [#tpu.dimension_semantics<parallel>, #tpu.dimension_semantics<arbitrary>, #tpu.dimension_semantics<arbitrary>], iteration_bounds = array<i64: 2, 1, 4>, scalar_prefetch = 0 : i64, scratch_operands = 5 : i64, tpu.core_type = #tpu.core_type<tc>, window_params = [{transform_indices = @transform_0, window_bounds = array<i64: 1, 16, 32>}, {pipeline_mode = #tpu.pipeline_mode<synchronous>, transform_indices = @transform_1, window_bounds = array<i64: 32, 32>}, {pipeline_mode = #tpu.pipeline_mode<synchronous>, transform_indices = @transform_2, window_bounds = array<i64: 1, 32>}, {pipeline_mode = #tpu.pipeline_mode<synchronous>, transform_indices = @transform_3, window_bounds = array<i64: 1, 16>}, {pipeline_mode = #tpu.pipeline_mode<synchronous>, transform_indices = @transform_4, window_bounds = array<i64: 4, 32>}, {pipeline_mode = #tpu.pipeline_mode<synchronous>, transform_indices = @transform_5, window_bounds = array<i64: 4, 1>}, {pipeline_mode = #tpu.pipeline_mode<synchronous>, transform_indices = @transform_6, window_bounds = array<i64: 32, 4>}, {pipeline_mode = #tpu.pipeline_mode<synchronous>, transform_indices = @transform_7, window_bounds = array<i64: 1, 4>}, {transform_indices = @transform_8, window_bounds = array<i64: 1, 1, 16, 16>}]} {
    %c0_i32 = arith.constant 0 : i32
    %0 = arith.cmpi eq, %arg1, %c0_i32 : i32
    %c0_i32_0 = arith.constant 0 : i32
    %1 = arith.cmpi eq, %arg2, %c0_i32_0 : i32
    %2 = arith.andi %0, %1 : i1
    %3 = arith.extui %2 : i1 to i32
    %c0_i32_1 = arith.constant 0 : i32
    %4 = arith.cmpi ne, %3, %c0_i32_1 : i32
    scf.if %4 {
      %c0_13 = arith.constant 0 : index
      %c0_14 = arith.constant 0 : index
      %c0_15 = arith.constant 0 : index
      %38 = vector.load %arg3[%c0_13, %c0_14, %c0_15] : memref<1x16x32xf32, #tpu.memory_space<vmem>>, vector<1x16x32xf32>
      %39 = vector.shape_cast %38 : vector<1x16x32xf32> to vector<16x32xf32>
      %c0_16 = arith.constant 0 : index
      %c0_17 = arith.constant 0 : index
      %40 = vector.load %arg4[%c0_16, %c0_17] : memref<32x32xf32, #tpu.memory_space<vmem>>, vector<32x32xf32>
      %cst_18 = arith.constant dense<0.000000e+00> : vector<16x32xf32>
      %41 = tpu.matmul %39, %40, %cst_18 {dimension_numbers = #tpu.dot_dimension_numbers<[1], [0], [0], [1], [0, 0, 1, 1], [], []>} : vector<16x32xf32>, vector<32x32xf32>, vector<16x32xf32> -> vector<16x32xf32>
      %c0_19 = arith.constant 0 : index
      %c0_20 = arith.constant 0 : index
      %42 = vector.load %arg5[%c0_19, %c0_20] : memref<1x32xf32, #tpu.memory_space<vmem>>, vector<1x32xf32>
      %43 = vector.broadcast %42 : vector<1x32xf32> to vector<16x32xf32>
      %44 = arith.addf %41, %43 : vector<16x32xf32>
      %45 = vector.extract_strided_slice %44 {offsets = [0, 0], sizes = [16, 16], strides = [1, 1]} : vector<16x32xf32> to vector<16x16xf32>
      %c0_21 = arith.constant 0 : index
      %c0_22 = arith.constant 0 : index
      %46 = vector.load %arg6[%c0_21, %c0_22] : memref<1x16xf32, #tpu.memory_space<vmem>>, vector<1x16xf32>
      %47 = vector.broadcast %46 : vector<1x16xf32> to vector<16x16xf32>
      %48 = arith.mulf %45, %47 : vector<16x16xf32>
      %c0_23 = arith.constant 0 : index
      %c0_24 = arith.constant 0 : index
      %49 = vector.load %arg12[%c0_23, %c0_24] : memref<16x16xf32, #tpu.memory_space<vmem>>, vector<16x16xf32>
      tpu.vector_store %arg12[%c0_23, %c0_24], %48 {strides = array<i32>} : memref<16x16xf32, #tpu.memory_space<vmem>>, vector<16x16xf32>,
      %50 = vector.extract_strided_slice %44 {offsets = [0, 16], sizes = [16, 16], strides = [1, 1]} : vector<16x32xf32> to vector<16x16xf32>
      %c0_25 = arith.constant 0 : index
      %c0_26 = arith.constant 0 : index
      %51 = vector.load %arg13[%c0_25, %c0_26] : memref<16x16xf32, #tpu.memory_space<vmem>>, vector<16x16xf32>
      tpu.vector_store %arg13[%c0_25, %c0_26], %50 {strides = array<i32>} : memref<16x16xf32, #tpu.memory_space<vmem>>, vector<16x16xf32>,
      %c0_27 = arith.constant 0 : index
      %c0_28 = arith.constant 0 : index
      %52 = vector.load %arg7[%c0_27, %c0_28] : memref<4x32xf32, #tpu.memory_space<vmem>>, vector<4x32xf32>
      %cst_29 = arith.constant dense<0.000000e+00> : vector<4x16xf32>
      %53 = tpu.matmul %52, %44, %cst_29 {dimension_numbers = #tpu.dot_dimension_numbers<[1], [1], [0], [0], [0, 0, 1, 0], [], []>} : vector<4x32xf32>, vector<16x32xf32>, vector<4x16xf32> -> vector<4x16xf32>
      %c0_30 = arith.constant 0 : index
      %c0_31 = arith.constant 0 : index
      %54 = vector.load %arg8[%c0_30, %c0_31] : memref<4x1xf32, #tpu.memory_space<vmem>>, vector<4x1xf32>
      %55 = vector.broadcast %54 : vector<4x1xf32> to vector<4x16xf32>
      %56 = arith.addf %53, %55 : vector<4x16xf32>
      %c0_32 = arith.constant 0 : index
      %c0_33 = arith.constant 0 : index
      %57 = vector.load %arg14[%c0_32, %c0_33] : memref<4x16xf32, #tpu.memory_space<vmem>>, vector<4x16xf32>
      tpu.vector_store %arg14[%c0_32, %c0_33], %56 {strides = array<i32>} : memref<4x16xf32, #tpu.memory_space<vmem>>, vector<4x16xf32>,
      %c0_34 = arith.constant 0 : index
      %c0_35 = arith.constant 0 : index
      %58 = vector.load %arg9[%c0_34, %c0_35] : memref<32x4xf32, #tpu.memory_space<vmem>>, vector<32x4xf32>
      %cst_36 = arith.constant dense<0.000000e+00> : vector<16x4xf32>
      %59 = tpu.matmul %44, %58, %cst_36 {dimension_numbers = #tpu.dot_dimension_numbers<[1], [0], [0], [1], [0, 0, 1, 1], [], []>} : vector<16x32xf32>, vector<32x4xf32>, vector<16x4xf32> -> vector<16x4xf32>
      %c0_37 = arith.constant 0 : index
      %c0_38 = arith.constant 0 : index
      %60 = vector.load %arg10[%c0_37, %c0_38] : memref<1x4xf32, #tpu.memory_space<vmem>>, vector<1x4xf32>
      %61 = vector.broadcast %60 : vector<1x4xf32> to vector<16x4xf32>
      %62 = arith.addf %59, %61 : vector<16x4xf32>
      %c0_39 = arith.constant 0 : index
      %c0_40 = arith.constant 0 : index
      %63 = vector.load %arg15[%c0_39, %c0_40] : memref<16x4xf32, #tpu.memory_space<vmem>>, vector<16x4xf32>
      tpu.vector_store %arg15[%c0_39, %c0_40], %62 {strides = array<i32>} : memref<16x4xf32, #tpu.memory_space<vmem>>, vector<16x4xf32>,
    } else {
    }
    %c16_i32 = arith.constant 16 : i32
    %5 = arith.muli %arg1, %c16_i32 : i32
    %6 = tpu.assume_multiple %5, 16 : i32
    %c0_i32_2 = arith.constant 0 : i32
    %7 = arith.cmpi eq, %arg2, %c0_i32_2 : i32
    %8 = arith.extui %7 : i1 to i32
    %c0_i32_3 = arith.constant 0 : i32
    %9 = arith.cmpi ne, %8, %c0_i32_3 : i32
    scf.if %9 {
      %38 = arith.index_cast %6 : i32 to index
      %c0_13 = arith.constant 0 : index
      %39 = vector.load %arg12[%38, %c0_13] : memref<16x16xf32, #tpu.memory_space<vmem>>, vector<16x16xf32>
      %c0_14 = arith.constant 0 : index
      %c0_15 = arith.constant 0 : index
      %40 = vector.load %arg13[%c0_14, %c0_15] : memref<16x16xf32, #tpu.memory_space<vmem>>, vector<16x16xf32>
      %cst_16 = arith.constant dense<0.000000e+00> : vector<16x16xf32>
      %41 = tpu.matmul %39, %40, %cst_16 {dimension_numbers = #tpu.dot_dimension_numbers<[1], [1], [0], [0], [0, 0, 1, 0], [], []>} : vector<16x16xf32>, vector<16x16xf32>, vector<16x16xf32> -> vector<16x16xf32>
      %c0_17 = arith.constant 0 : index
      %c0_18 = arith.constant 0 : index
      %42 = vector.load %arg16[%c0_17, %c0_18] : memref<16x16xf32, #tpu.memory_space<vmem>>, vector<16x16xf32>
      tpu.vector_store %arg16[%c0_17, %c0_18], %41 {strides = array<i32>} : memref<16x16xf32, #tpu.memory_space<vmem>>, vector<16x16xf32>,
    } else {
    }
    %10 = arith.index_cast %arg2 : i32 to index
    %c0 = arith.constant 0 : index
    %11 = vector.load %arg14[%10, %c0] : memref<4x16xf32, #tpu.memory_space<vmem>>, vector<1x16xf32>
    %12 = arith.index_cast %6 : i32 to index
    %c0_4 = arith.constant 0 : index
    %13 = vector.load %arg15[%12, %c0_4] : memref<16x4xf32, #tpu.memory_space<vmem>>, vector<16x4xf32>
    %14 = tpu.iota {dimensions = array<i32: 1>} : vector<1x4xi32>
    %15 = vector.broadcast %arg2 : i32 to vector<1x4xi32>
    %16 = arith.cmpi eq, %14, %15 : vector<1x4xi32>
    %cst = arith.constant 0.000000e+00 : f32
    %17 = vector.shape_cast %16 : vector<1x4xi1> to vector<1x4xi1>
    %18 = vector.broadcast %17 : vector<1x4xi1> to vector<16x4xi1>
    %19 = vector.broadcast %cst : f32 to vector<16x4xf32>
    %20 = arith.select %18, %13, %19 : vector<16x4xi1>, vector<16x4xf32>
    %cst_5 = arith.constant dense<0.000000e+00> : vector<16xf32>
    %21 = vector.multi_reduction <add>, %20, %cst_5 [1] : vector<16x4xf32> to vector<16xf32>
    %22 = vector.shape_cast %21 : vector<16xf32> to vector<16x1xf32>
    %c0_6 = arith.constant 0 : index
    %c0_7 = arith.constant 0 : index
    %23 = vector.load %arg16[%c0_6, %c0_7] : memref<16x16xf32, #tpu.memory_space<vmem>>, vector<16x16xf32>
    %24 = vector.broadcast %11 : vector<1x16xf32> to vector<16x16xf32>
    %25 = arith.addf %23, %24 : vector<16x16xf32>
    %26 = vector.broadcast %22 : vector<16x1xf32> to vector<16x16xf32>
    %27 = arith.addf %25, %26 : vector<16x16xf32>
    %28 = tpu.iota {dimensions = array<i32: 0>} : vector<16x16xi32>
    %29 = vector.broadcast %6 : i32 to vector<16x16xi32>
    %30 = arith.addi %29, %28 : vector<16x16xi32>
    %31 = tpu.iota {dimensions = array<i32: 1>} : vector<16x16xi32>
    %32 = arith.cmpi sle, %30, %31 : vector<16x16xi32>
    %cst_8 = arith.constant 0.000000e+00 : f32
    %33 = vector.broadcast %cst_8 : f32 to vector<16x16xf32>
    %34 = arith.select %32, %27, %33 : vector<16x16xi1>, vector<16x16xf32>
    %c0_9 = arith.constant 0 : index
    %c0_10 = arith.constant 0 : index
    %c0_11 = arith.constant 0 : index
    %c0_12 = arith.constant 0 : index
    %35 = vector.load %arg11[%c0_9, %c0_10, %c0_11, %c0_12] : memref<1x1x16x16xf32, #tpu.memory_space<vmem>>, vector<1x1x16x16xf32>
    %36 = vector.shape_cast %35 : vector<1x1x16x16xf32> to vector<16x16xf32>
    %37 = vector.shape_cast %34 : vector<16x16xf32> to vector<1x1x16x16xf32>
    tpu.vector_store %arg11[%c0_9, %c0_10, %c0_11, %c0_12], %37 {strides = array<i32>} : memref<1x1x16x16xf32, #tpu.memory_space<vmem>>, vector<1x1x16x16xf32>,
    return
  }
  func.func @transform_0(%arg0: i32, %arg1: i32, %arg2: i32) -> (i32, i32, i32) {
    %c0_i32 = arith.constant 0 : i32
    %c0_i32_0 = arith.constant 0 : i32
    %c0_i32_1 = arith.constant 0 : i32
    return %arg0, %c0_i32, %c0_i32_0 : i32, i32, i32
  }
  func.func @transform_1(%arg0: i32, %arg1: i32, %arg2: i32) -> (i32, i32) {
    %c0_i32 = arith.constant 0 : i32
    %c0_i32_0 = arith.constant 0 : i32
    %c0_i32_1 = arith.constant 0 : i32
    return %c0_i32, %c0_i32_0 : i32, i32
  }
  func.func @transform_2(%arg0: i32, %arg1: i32, %arg2: i32) -> (i32, i32) {
    %c0_i32 = arith.constant 0 : i32
    %c0_i32_0 = arith.constant 0 : i32
    %c0_i32_1 = arith.constant 0 : i32
    return %c0_i32, %c0_i32_0 : i32, i32
  }
  func.func @transform_3(%arg0: i32, %arg1: i32, %arg2: i32) -> (i32, i32) {
    %c0_i32 = arith.constant 0 : i32
    %c0_i32_0 = arith.constant 0 : i32
    %c0_i32_1 = arith.constant 0 : i32
    return %c0_i32, %c0_i32_0 : i32, i32
  }
  func.func @transform_4(%arg0: i32, %arg1: i32, %arg2: i32) -> (i32, i32) {
    %c0_i32 = arith.constant 0 : i32
    %c0_i32_0 = arith.constant 0 : i32
    %c0_i32_1 = arith.constant 0 : i32
    return %c0_i32, %c0_i32_0 : i32, i32
  }
  func.func @transform_5(%arg0: i32, %arg1: i32, %arg2: i32) -> (i32, i32) {
    %c0_i32 = arith.constant 0 : i32
    %c0_i32_0 = arith.constant 0 : i32
    %c0_i32_1 = arith.constant 0 : i32
    return %c0_i32, %c0_i32_0 : i32, i32
  }
  func.func @transform_6(%arg0: i32, %arg1: i32, %arg2: i32) -> (i32, i32) {
    %c0_i32 = arith.constant 0 : i32
    %c0_i32_0 = arith.constant 0 : i32
    %c0_i32_1 = arith.constant 0 : i32
    return %c0_i32, %c0_i32_0 : i32, i32
  }
  func.func @transform_7(%arg0: i32, %arg1: i32, %arg2: i32) -> (i32, i32) {
    %c0_i32 = arith.constant 0 : i32
    %c0_i32_0 = arith.constant 0 : i32
    %c0_i32_1 = arith.constant 0 : i32
    return %c0_i32, %c0_i32_0 : i32, i32
  }
  func.func @transform_8(%arg0: i32, %arg1: i32, %arg2: i32) -> (i32, i32, i32, i32) {
    %c0_i32 = arith.constant 0 : i32
    %c0_i32_0 = arith.constant 0 : i32
    return %arg0, %arg2, %arg1, %c0_i32 : i32, i32, i32, i32
  }
}

</mosaic_0001>

<bundles_post_ra>
// kernel: tpu_custom_call.1
= control target key start
LH: loop header
LB: loop body
LE: loop exit
PB: predicated region body
PF: predicated region fallthrough
CT: control target
= control target key end

     0   :  { %13 = vsyncpa [#allocation8], 0  ;;  %s1191_s0 = inlined_call_operand.vmem [shape: f32[2,16,32], index: 0, kind: input, shape index: {}]   ;;  %s1192_s1 = inlined_call_operand.hbm [shape: f32[32,32], index: 1, kind: input, shape index: {}]   ;;  %s1193_s2 = inlined_call_operand.vmem [shape: f32[1,32], index: 2, kind: input, shape index: {}]   ;;  %s1194_s3 = inlined_call_operand.vmem [shape: f32[1,16], index: 3, kind: input, shape index: {}]   ;;  %s1195_s4 = inlined_call_operand.vmem [shape: f32[4,32], index: 4, kind: input, shape index: {}]   ;;  %s1196_s5 = inlined_call_operand.vmem [shape: f32[4,1], index: 5, kind: input, shape index: {}]   ;;  %s1197_s6 = inlined_call_operand.vmem [shape: f32[32,4], index: 6, kind: input, shape index: {}]   ;;  %s1198_s7 = inlined_call_operand.vmem [shape: f32[1,4], index: 7, kind: input, shape index: {}]   ;;  %s1199_s8 = inlined_call_operand.hbm [shape: f32[2,4,16,16], index: 8, kind: output, shape index: {}]  }
   0x1   :  { %14 = vsyncpa [#allocation9], 0 }
   0x2   :  { %16 = vsyncpa [#allocation9 + $0x1], 0  ;;  %s997_s27 = smov 0   ;;  %s999_s28 = smov 0  }
   0x3   :  { %s1001_s29 = smov 0   ;;  %s1003_s30 = smov 0  }
   0x4   :  { %s1005_s9 = smov 0   ;;  %s1007_s10 = smov 0  }
   0x5   :  { %s1009_s11 = smov 0   ;;  %s1011_s12 = smov 0  }
   0x6 LB: > { %s685_s13 = sadd.s32 4294967295, %s943_s12   ;;  %s686_s14 = sadd.s32 4294967294, %s943_s12   ;;  %s943_s12 = sphi %s1011_s12, %s22_s12   ;;  %s939_s11 = sphi %s1009_s11, %s1215_s11   ;;  %s935_s10 = sphi %s1007_s10, %s1214_s10   ;;  %s931_s9 = sphi %s1005_s9, %s1213_s9   ;;  %s927_s30 = sphi %s1003_s30, %s1212_s30   ;;  %s923_s29 = sphi %s1001_s29, %s1211_s29   ;;  %s919_s28 = sphi %s999_s28, %s1210_s28   ;;  %s915_s27 = sphi %s997_s27, %s1209_s27  }
   0x7   : > { %s34_s15 = sadd.s32 1, %s935_s10  ;;  %s41_s16 = sadd.s32 1, %s939_s11 }
   0x8   : > { %p35_p0 = scmp.ge.s32.totalorder %s34_s15, 4  ;;  %s225_s17 = sadd.s32 1, %s923_s29 }
   0x9   : > { %p235_p1 = scmp.ne.s32.totalorder %s923_s29, %s919_s28  ;;  %p236_p2 = scmp.eq.s32.totalorder %s685_s13, 7 }
   0xa   : > { %s1217_s15 = smov (%p35_p0, %s34_s15), 0  ;;  %s1219_s16 = smov (!%p35_p0, %s41_s16), %s939_s11 }
   0xb   : > { %1202 = sst [smem:[#allocation13_spill]] %s1217_s15  ;;  %s219_s18 = ssub.s32 %s935_s10, %s1217_s15 }
   0xc   : > { %p1049_p3 = por %p236_p2, %p235_p1  ;;  %p43_p4 = scmp.ge.s32.totalorder %s1219_s16, 2 }
   0xd   : > { %p241_p5 = scmp.ne.s32.totalorder %s919_s28, %s915_s27  ;;  %p242_p6 = scmp.eq.s32.totalorder %s686_s14, 7 }
   0xe   : > { %p687_p7 = scmp.ge.s32.totalorder %s943_s12, 1  ;;  %s1221_s16 = smov (%p43_p4, %s1219_s16), 0 }
   0xf   : > { %p1058_p8 = por %p242_p6, %p241_p5  ;;  %p249_p9 = scmp.lt.s32.totalorder %s943_s12, 9 }
  0x10   : > { %s218_s21 = ssub.s32 %s939_s11, %s1221_s16  ;;  %p1069_p12 = scmp.eq.s32.totalorder %s685_s13, 0 }
  0x11   : > { %s220_s22 = sor.u32 %s219_s18, %s218_s21  ;;  %p1065_p10 = pnand %p687_p7, %p249_p9 }
  0x12   : > { %p223_p11 = scmp.eq.s32.totalorder %s220_s22, 0  ;;  %s260_s14 = sshll.u32 %s1192_s1, 4  ;;  %s261_s14 = int_to_ptr.hbm [resolvable:$true] %s260_s14 }
  0x13   : > { %p728_p13 = pneg %p1065_p10  ;;  %s945_s18 = smov [#allocation7]  }
  0x14   : > { %s1079_s15 = scalar_select %p223_p11, %s923_s29, %s225_s17  }
  0x15   : > { %s262_s21 = sshll.u32 %s945_s18, 4  ;;  %p729_p0 = pnand %p1069_p12, %p728_p13  ;;  %s263_s21 = int_to_ptr.vmem [resolvable:$true] %s262_s21 }
  0x16   : > { %s946_s22 = smov 128   ;;  %s947_s13 = smov 8  }
  0x17   : > { %731 = dma.hbm_to_vmem [thread:$0]  (!%p729_p0), %s261_s14, 512, %s263_s21, [#allocation8], %s946_s22, %s946_s22, %s947_s13  }
  0x18   : > { %304 = sbr.rel (%p1065_p10) target bundleno = 592 (0x250), region = 52 }
  0x1d   : > { %906 = dma.done.wait (%p1069_p12), [#allocation8], 512  }
  0x1e   : > { %908 = vsyncadd (%p1069_p12), [#allocation8], 4294966784  ;;  %s1201_s17 = sand.u32 1, %s919_s28   ;;  %p339_p1 = scmp.lt.s32.totalorder %s931_s9, 1 }
  0x1f   : > { %s692_s25 = sshll.u32 %s1201_s17, 4  ;;  %p346_p2 = scmp.eq.s32.totalorder %s927_s30, 0 }
  0x20   : > { %s340_s26 = scalar_select %p339_p1, %s931_s9, 1  ;;  %v356_v0 = vld [vmem:[#allocation7 + $0x18] sm:$0xff] (%p346_p2)  ;;  %v355_v1 = vld [vmem:[#allocation7 + $0x10] sm:$0xff] (%p346_p2)  ;;  %v354_v2 = vld [vmem:[#allocation7 + $0x8] sm:$0xff] (%p346_p2)  ;;  %v948_v3 = vmov (%p346_p2), 0   ;;  %vm361_vm0 = vcmask (%p346_p2), 261120  }
  0x21   : > { %s1098_s22 = scalar_lea.vmem [#allocation10], %s692_s25  ;;  %350 = sbr.rel (!%p346_p2) target bundleno = 311 (0x137), region = 60  ;;  %380 = vmatpush.msra.mxu0 (%p346_p2), %v356_v0  ;;  %716 = vmatpush.msra.mxu3 (%p346_p2), %v356_v0  ;;  %v411_v4 = vld [vmem:[%s1196_s5] sm:$0xf] (%p346_p2)  ;;  %v449_v5 = vld [vmem:[%s1197_s6 + $0x18] sm:$0xff] (%p346_p2)  ;;  %v448_v6 = vld [vmem:[%s1197_s6 + $0x10] sm:$0xff] (%p346_p2) }
  0x22   : > { %s714_s14 = sshll.u32 %s340_s26, 4  ;;  %810 = vset.pattern.permute.xlu0 (%p346_p2), %v948_v3  ;;  %v353_v7 = vld [vmem:[#allocation7] sm:$0xff] (%p346_p2)  ;;  %466 = vmatpush.msra.mxu2 (%p346_p2), %v449_v5  ;;  %v811_v12 = vld [vmem:[%s1193_s2] ss:$0 sm:$0xff] (%p346_p2)  ;;  %vm397_vm1 = vcmask (%p346_p2), 130048   ;;  %vm477_vm2 = vcmask (%p346_p2), 31744  }
  0x23   : > { %s343_s21 = scalar_lea.vmem %s1191_s0, %s714_s14  ;;  %381 = vmatpush.msra.mxu0 (%p346_p2), %v355_v1  ;;  %717 = vmatpush.msra.mxu3 (%p346_p2), %v355_v1  ;;  %v447_v10 = vld [vmem:[%s1197_s6 + $0x8] sm:$0xff] (%p346_p2)  ;;  %v446_v11 = vld [vmem:[%s1197_s6] sm:$0xff] (%p346_p2)  ;;  %s949_s14 = smov (%p346_p2), 112   ;;  %vm444_vm3 = vcmask (%p346_p2), 125952  }
  0x24   : > { %414 = vperm.xlu0 (%p346_p2), %810, %v411_v4   ;;  %v351_v8 = vld [vmem:[%s343_s21] sm:$0xff] (%p346_p2)  ;;  %v352_v9 = vld [vmem:[%s343_s21 + $0x8] sm:$0xff] (%p346_p2)  ;;  %467 = vmatpush.msra.mxu2 (%p346_p2), %v448_v6 }
  0x25   : > { %382 = vmatpush.msra.mxu0 (%p346_p2), %v354_v2  ;;  %718 = vmatpush.msra.mxu3 (%p346_p2), %v354_v2  ;;  %v812_v13 = vld [vmem:[%s1194_s3] ss:$0 sm:$0xff] (%p346_p2) }
  0x26   : > { %468 = vmatpush.msra.mxu2 %v447_v10  ;;  %v410_v20 = vld [vmem:[%s1195_s4] sm:$0xf] }
  0x27   : > { %383 = vmatpush.msra.mxu0 %v353_v7  ;;  %719 = vmatpush.msra.mxu3 %v353_v7  ;;  %v813_v24 = vld [vmem:[%s1198_s7] ss:$0 sm:$0xff] }
  0x28   : > { %696 = vmatmul.msk.f32.vlgmr.msra.gmra.mxu0 %vm361_vm0, %v351_v8  ;;  %697 = vmatmul.msk.f32.vlgmr.msra.gmra.mxu3 %vm361_vm0, %v352_v9 }
  0x29   : > { %469 = vmatpush.msra.mxu2 %v446_v11 }
  0x96   : > { %v415_v21 = vpop.permute.xlu0 %414 }
  0xa5   : > { %v385_v14 = vpop.f32.mrf.mxu0 }
  0xa6   : > { %v386_v15 = vadd.f32 %v811_v12, %v385_v14 }
  0xa8   : > { %v395_v16 = vmul.f32 %v812_v13, %v386_v15  ;;  %402 = vrot.lane.b32.xlu0 %v386_v15, %s949_s14  ;;  %701 = vmatmul.msk.f32.vlgmr.msra.gmra.mxu2 %vm361_vm0, %v386_v15 }
  0xaa   : > { %398 = vst.msk [vmem:[#allocation2] sm:$0xff] %vm397_vm1, %v395_v16 }
  0xab   : > { %v388_v17 = vpop.f32.mrf.mxu3 }
  0xac   : > { %v389_v18 = vadd.f32 %v811_v12, %v388_v17 }
  0xae   : > { %v396_v19 = vmul.f32 %v812_v13, %v389_v18  ;;  %698 = vmatpush.xpose.msk.msra.mxu1 %vm361_vm0, %v389_v18  ;;  %404 = vrot.lane.b32.xlu1 %v389_v18, %s949_s14 }
  0xb0   : > { %702 = vmatmul.msk.f32.gmra.mxu2 %vm361_vm0, %v389_v18  ;;  %399 = vst.msk [vmem:[#allocation2 + $0x8] sm:$0xff] %vm397_vm1, %v396_v19 }
  0xb2   : > { %699 = vmatpush.xpose.msk.msra.mxu1 %vm361_vm0, %v386_v15 }
  0xb5   : > { %700 = vmatmul.msk.f32.vlgmr.msra.gmra.mxu1 %vm361_vm0, %v410_v20 }
 0x11a   : > { %v403_v22 = vpop.permute.xlu0 %402 }
 0x11b   : > { %408 = vst.msk [vmem:[#allocation3] sm:$0xff] %vm397_vm1, %v403_v22 }
 0x120   : > { %v405_v23 = vpop.permute.xlu1 %404 }
 0x121   : > { %409 = vst.msk [vmem:[#allocation3 + $0x8] sm:$0xff] %vm397_vm1, %v405_v23 }
 0x12b   : > { %v471_v25 = vpop.f32.mrf.mxu2 }
 0x12c   : > { %v472_v26 = vadd.f32 %v813_v24, %v471_v25 }
 0x12e   : > { %478 = vst.msk [vmem:[#allocation5] sm:$0xff] %vm477_vm2, %v472_v26 }
 0x132   : > { %v441_v27 = vpop.f32.mrf.mxu1 }
 0x133   : > { %v442_v28 = vadd.f32 %v441_v27, %v415_v21  ;;  %v474_v29 = vpop.f32.mrf.mxu2 }
 0x134   : > { %v475_v30 = vadd.f32 %v813_v24, %v474_v29 }
 0x135   : > { %445 = vst.msk [vmem:[#allocation4] sm:$0xf] %vm444_vm3, %v442_v28 }
 0x136   : > { %479 = vst.msk [vmem:[#allocation5 + $0x8] sm:$0xff] %vm477_vm2, %v475_v30 }
 0x137 PF: > { %p703_p4 = scmp.ne.s32.totalorder %s927_s30, 0 }
 0x139   : > { %483 = sbr.rel (%p703_p4) target bundleno = 454 (0x1c6), region = 64 }
 0x13e   : > { %v488_v31 = vld [vmem:[#allocation3 + $0x8] sm:$0xff]  ;;  %vm489_vm4 = vcmask 130048   ;;  %v487_v32 = vld [vmem:[#allocation3] sm:$0xff]  ;;  %v485_v33 = vld [vmem:[#allocation2] sm:$0xff] }
 0x13f   : > { %704 = vmatpush.xpose.msk.msra.mxu0 %vm489_vm4, %v488_v31  ;;  %720 = vmatpush.xpose.msk.msra.mxu1 %vm489_vm4, %v488_v31  ;;  %v486_v34 = vld [vmem:[#allocation2 + $0x8] sm:$0xff] }
 0x143   : > { %705 = vmatpush.xpose.msk.msra.mxu0 %vm489_vm4, %v487_v32  ;;  %721 = vmatpush.xpose.msk.msra.mxu1 %vm489_vm4, %v487_v32 }
 0x146   : > { %706 = vmatmul.msk.f32.vlgmr.msra.gmra.mxu0 %vm489_vm4, %v485_v33  ;;  %707 = vmatmul.msk.f32.vlgmr.msra.gmra.mxu1 %vm489_vm4, %v486_v34 }
 0x1c3   : > { %v519_v35 = vpop.f32.mrf.mxu0  ;;  %v522_v36 = vpop.f32.mrf.mxu1 }
 0x1c4   : > { %525 = vst.msk [vmem:[#allocation6] sm:$0xff] %vm489_vm4, %v519_v35 }
 0x1c5   : > { %526 = vst.msk [vmem:[#allocation6 + $0x8] sm:$0xff] %vm489_vm4, %v522_v36 }
 0x1c6 PF: > { %v532_v37 = vlaneseq  ;;  %v534_v38 = vstv %s927_s30  ;;  %s527_s13 = scalar_lea.vmem [#allocation4], %s927_s30  ;;  %v530_v39 = vld [vmem:[#allocation5] sm:$0xff]  ;;  %vm540_vm5 = vcmask 31744   ;;  %v531_v43 = vld [vmem:[#allocation5 + $0x8] sm:$0xff]  ;;  %s709_s26 = sshll.u32 %s927_s30, 1  ;;  %vm564_vm8 = vcmask 130048  }
 0x1c7   : > { %v814_v46 = vld [vmem:[%s527_s13] ss:$0 sm:$0xff]  ;;  %s710_s21 = sshll.u32 %s931_s9, 3  ;;  %s584_s30 = sshll.u32 %s1098_s22, 4  ;;  %s585_s30 = int_to_ptr.vmem [resolvable:$true] %s584_s30 }
 0x1c8   : > { %v533_v40 = vand.u32 127, %v532_v37  ;;  %v555_v48 = vshrl.u32 %v532_v37, 7  ;;  %s581_s25 = sadd.s32 %s710_s21, %s709_s26  ;;  %s1207_s24 = sand.u32 1, %s919_s28  }
 0x1c9   : > { %s711_s14 = sshll.u32 %s581_s25, 3  ;;  %s568_s13 = scalar_lea.sflag [#allocation9], %s1207_s24 }
 0x1ca   : > { %vm535_vm6 = vcmp.eq.s32.totalorder %v533_v40, %v534_v38  ;;  %vm560_vm7 = vcmp.le.s32.totalorder %v555_v48, %v533_v40  ;;  %s583_s18 = scalar_lea.hbm %s1199_s8, %s711_s14  ;;  %v556_v54 = vadd.s32 8, %v555_v48  ;;  %s865_s17 = scalar_lea.hbm %s1199_s8, 128 }
 0x1cb   : > { %v538_v41 = vsel %vm535_vm6, %v530_v39, 0.0  ;;  %v539_v44 = vsel %vm535_vm6, %v531_v43, 0.0  ;;  %v547_v47 = vld [vmem:[#allocation6] sm:$0xff]  ;;  %s586_s9 = sshll.u32 %s583_s18, 4  ;;  %s587_s9 = int_to_ptr.hbm [resolvable:$true] %s586_s9 }
 0x1cc   : > { %v541_v42 = vsel %vm540_vm5, %v538_v41, 0.0  ;;  %v544_v45 = vsel %vm540_vm5, %v539_v44, 0.0  ;;  %v550_v49 = vadd.f32 %v814_v46, %v547_v47  ;;  %v548_v52 = vld [vmem:[#allocation6 + $0x8] sm:$0xff]  ;;  %vm561_vm9 = vcmp.le.s32.totalorder %v556_v54, %v533_v40  ;;  %s859_s26 = sshra.s32 %s587_s9, 4  ;;  %s860_s26 = int_to_ptr.hbm [resolvable:$true] %s859_s26 }
 0x1cd   : > { %542 = vadd.xlane.f32.xlu0 %v541_v42  ;;  %v551_v55 = vadd.f32 %v814_v46, %v548_v52  ;;  %s861_s21 = scalar_lea.hbm %s860_s26, 16  ;;  %p866_p9 = scmp.lt.s32.totalorder %s860_s26, %s1199_s8 }
 0x1ce   : > { %p862_p5 = scmp.ne.s32.totalorder %s860_s26, %s861_s21  ;;  %p867_p10 = scmp.lt.s32.totalorder %s865_s17, %s861_s21 }
 0x1d0   : > { %p863_p6 = pnand %p862_p5, %p1049_p3  ;;  %p868_p11 = por %p867_p10, %p866_p9 }
 0x1d2   : > { %p864_p7 = pneg %p863_p6 }
 0x1d4   : > { %p869_p12 = pnand %p868_p11, %p864_p7 }
 0x1d5   : > { %545 = vadd.xlane.f32.xlu0 %v544_v45 }
 0x240   : > { %v543_v50 = vpop.xlane.xlu0 %542 }
 0x241   : > { %v552_v51 = vadd.f32 %v550_v49, %v543_v50 }
 0x243   : > { %v562_v53 = vsel %vm560_vm7, %v552_v51, 0.0 }
 0x244   : > { %565 = vst.msk [vmem:[%s1098_s22] sm:$0xff] %vm564_vm8, %v562_v53 }
 0x248   : > { %v546_v56 = vpop.xlane.xlu0 %545 }
 0x249   : > { %v553_v57 = vadd.f32 %v551_v55, %v546_v56 }
 0x24b   : > { %v563_v58 = vsel %vm561_vm9, %v553_v57, 0.0 }
 0x24c   : > { %566 = vst.msk [vmem:[%s1098_s22 + $0x8] sm:$0xff] %vm564_vm8, %v563_v58 }
 0x24d   : > { %872 = shalt.err (!%p869_p12)
}
 0x24e   : > { %s950_s22 = smov 128   ;;  %s951_s24 = smov 8  }
 0x24f   : > { %726 = dma.vmem_to_hbm [thread:$0]  (%p1049_p3), %s585_s30, 256, %s587_s9, %s568_s13, %s950_s22, %s950_s22, %s951_s24  }
 0x250 PF: > { %p738_p13 = scmp.ge.s32.totalorder %s943_s12, 2  ;;  %s601_s25 = sand.u32 1, %s915_s27  }
 0x251   : > { %s602_s14 = scalar_lea.sflag [#allocation9], %s601_s25 }
 0x252   : > { %p733_p0 = pnand %p738_p13, %p1058_p8 }
 0x254   : > { %p734_p1 = pneg %p733_p0 }
 0x256   : > { %910 = dma.done.wait (%p734_p1), %s602_s14, 256  }
 0x257   : > { %912 = vsyncadd (%p734_p1), %s602_s14, 4294967040  ;;  %s22_s12 = sadd.s32 1, %s943_s12   ;;  %s1208_s19 = sld [smem:[#allocation13_spill]] }
 0x258   : > { %p19_p2 = scmp.ge.s32.totalorder %s22_s12, 10   ;;  %s1209_s27 = smov %s919_s28 }
 0x259   : > { %s1210_s28 = smov %s923_s29  ;;  %s1211_s29 = smov %s1079_s15 }
 0x25a   : > { %s1212_s30 = smov %s935_s10  ;;  %s1213_s9 = smov %s939_s11 }
 0x25b   : > { %s1215_s11 = smov %s1221_s16  ;;  %21 = sbr.rel (!%p19_p2) target bundleno = 6 (0x6), region = 103 }
 0x25d   : > { %s1214_s10 = smov %s1208_s19 }
 0x260   :  { %608 = vsyncpa [#allocation8], 1 }
 0x261   :  { %610 = vsyncpa [#allocation8 + $0x1], 1 }
 0x262   :  { %611 = vsyncpa [#allocation9], 1 }
 0x263   :  { %613 = vsyncpa [#allocation9 + $0x1], 1 }

</bundles_post_ra>
